<compile_context>
chip_gen: v5e
topology: v5e:2x2
jax: 0.10.0
libtpu: 0.0.40
codegen_flags: <defaults>
</compile_context>

<pallas_src>
import functools

import jax
import jax.numpy as jnp
from jax import lax
from jax.experimental import pallas as pl
from jax.experimental.pallas import tpu as pltpu


def _round_up(a: int, b: int) -> int:
    return (a + b - 1) // b * b


def _sublane_multiple(*dtypes) -> int:
    # Second-to-last block-dim granularity: 8 for 4-byte, 16 for 2-byte, 32 for 1-byte.
    m = 8
    for dt in dtypes:
        m = max(m, 32 // max(1, jnp.dtype(dt).itemsize))
    return m


def _pad2(a, rows: int, cols: int):
    pr, pc = rows - a.shape[0], cols - a.shape[1]
    if pr == 0 and pc == 0:
        return a
    return jnp.pad(a, ((0, pr), (0, pc)))


def _tile_preset():
    """(tm, tn, tk, vmem_limit_bytes) chosen per TPU generation."""
    try:
        vmem = pltpu.get_tpu_info().vmem_capacity_bytes
    except Exception:
        vmem = 64 * 1024 * 1024  # be conservative (v7x-sized)
    if vmem >= 96 * 1024 * 1024:
        # v5e / v6e: 128 MiB VMEM -> big tiles, ~26 MiB of buffers (f32).
        return 512, 1024, 1024, 96 * 1024 * 1024
    # v7x (64 MiB VMEM) or unknown: ~15 MiB of buffers (f32).
    return 512, 512, 1024, 40 * 1024 * 1024


def _linear_add_add_kernel(x_ref, w_ref, b_ref, y_ref, z_ref, o_ref, acc_ref):
    # x_ref: (tm, tk)  w_ref: (tk, tn)  b_ref: (1, tn)
    # y_ref / z_ref / o_ref: (tm, tn)   acc_ref: (tm, tn) f32 scratch
    k = pl.program_id(2)

    @pl.when(k == 0)
    def _():
        acc_ref[...] = jnp.zeros_like(acc_ref)

    # Plain MXU matmul; weight was pre-transposed in the wrapper, so no XLU work.
    acc_ref[...] += jnp.dot(
        x_ref[...], w_ref[...], preferred_element_type=jnp.float32
    )

    @pl.when(k == pl.num_programs(2) - 1)
    def _():
        acc = acc_ref[...]
        acc = acc + b_ref[...].astype(jnp.float32)
        acc = acc + y_ref[...].astype(jnp.float32) + z_ref[...].astype(jnp.float32)
        o_ref[...] = acc.astype(o_ref.dtype)


@functools.partial(
    jax.jit,
    static_argnames=("tm", "tn", "tk", "vmem_limit", "compute_dtype", "donate_z"),
)
def _linear_add_add_impl(x, weight, bias, y, z, *, tm, tn, tk, vmem_limit,
                         compute_dtype, donate_z):
    K = x.shape[-1]
    N = weight.shape[0]
    lead_shape = x.shape[:-1]
    M = 1
    for d in lead_shape:
        M *= d

    out_dtype = x.dtype  # NOTE: output follows x.dtype; y/z/bias are cast in-kernel.

    x2 = x.reshape(M, K)
    wT = weight.T  # (K, N): fold the transpose into the wrapper's padded copy.
    if compute_dtype is not None:
        x2 = x2.astype(compute_dtype)
        wT = wT.astype(compute_dtype)

    sub = _sublane_multiple(x2.dtype, wT.dtype, y.dtype, z.dtype, out_dtype)

    # Effective tile sizes (shrink for small problems; keep hardware alignment).
    tm_eff = min(tm, _round_up(M, sub))
    tn_eff = min(tn, _round_up(N, 128))
    tk_eff = min(tk, _round_up(K, 128))

    M_pad = _round_up(M, tm_eff)
    N_pad = _round_up(N, tn_eff)
    K_pad = _round_up(K, tk_eff)

    # v7x has 2 TensorCores: if the grid would be 1x1xK, split N (padding-free)
    # so the "parallel" N axis has >= 2 blocks.
    if (M_pad // tm_eff == 1 and N_pad // tn_eff == 1
            and N_pad >= 256 and N_pad % 256 == 0):
        tn_eff = N_pad // 2

    # Zero-pad only where needed (K-padding is required for reduction correctness;
    # M/N padding is skipped automatically when already tile multiples).
    x2 = _pad2(x2, M_pad, K_pad)
    w2 = _pad2(wT, K_pad, N_pad)
    b2 = _pad2(bias.reshape(1, N), 1, N_pad)
    y2 = _pad2(y.reshape(M, N), M_pad, N_pad)
    z2 = _pad2(z.reshape(M, N), M_pad, N_pad)

    # Alias z -> out when it is free (z2 is a fresh padded buffer inside jit) or
    # the caller donates z; requires matching dtype.
    z_is_fresh = (M_pad != M) or (N_pad != N)
    aliases = {}
    if (donate_z or z_is_fresh) and z2.dtype == out_dtype:
        aliases = {4: 0}

    grid = (M_pad // tm_eff, N_pad // tn_eff, K_pad // tk_eff)

    out2 = pl.pallas_call(
        _linear_add_add_kernel,
        out_shape=jax.ShapeDtypeStruct((M_pad, N_pad), out_dtype),
        grid_spec=pltpu.PrefetchScalarGridSpec(
            num_scalar_prefetch=0,
            grid=grid,
            in_specs=[
                pl.BlockSpec((tm_eff, tk_eff), lambda i, j, k: (i, k)),  # x tile
                pl.BlockSpec((tk_eff, tn_eff), lambda i, j, k: (k, j)),  # W^T tile
                pl.BlockSpec((1, tn_eff), lambda i, j, k: (0, j)),       # bias row
                pl.BlockSpec((tm_eff, tn_eff), lambda i, j, k: (i, j)),  # y tile
                pl.BlockSpec((tm_eff, tn_eff), lambda i, j, k: (i, j)),  # z tile
            ],
            out_specs=pl.BlockSpec((tm_eff, tn_eff), lambda i, j, k: (i, j)),
            scratch_shapes=[pltpu.VMEM((tm_eff, tn_eff), jnp.float32)],
        ),
        compiler_params=pltpu.CompilerParams(
            dimension_semantics=("parallel", "parallel", "arbitrary"),
            vmem_limit_bytes=vmem_limit,
        ),
        input_output_aliases=aliases,
    )(x2, w2, b2, y2, z2)

    if (M_pad, N_pad) != (M, N):
        out2 = out2[:M, :N]
    return out2.reshape(*lead_shape, N)


def ipex_linear_add_add(x, weight, bias, y, z, *, tm=None, tn=None, tk=None,
                        compute_dtype=None, donate_z=False):
    """Fused out = x @ weight.T + bias + y + z.

    x:      (..., in_features)
    weight: (out_features, in_features)   (PyTorch nn.Linear convention)
    bias:   (out_features,) or None
    y, z:   (..., out_features)
    compute_dtype: optional matmul operand dtype (e.g. jnp.bfloat16) for the
                   native MXU path; accumulation and epilogue stay f32.
    """
    if bias is None:
        bias = jnp.zeros((weight.shape[0],), dtype=weight.dtype)
    ptm, ptn, ptk, vmem_limit = _tile_preset()
    tm = ptm if tm is None else tm
    tn = ptn if tn is None else tn
    tk = ptk if tk is None else tk
    cd = None if compute_dtype is None else jnp.dtype(compute_dtype)
    return _linear_add_add_impl(
        x, weight, bias, y, z,
        tm=tm, tn=tn, tk=tk, vmem_limit=vmem_limit,
        compute_dtype=cd, donate_z=donate_z,
    )


if __name__ == "__main__":
    key = jax.random.PRNGKey(0)
    kx, ky, kz, kw, kb = jax.random.split(key, 5)

    # --- Test 1: module-scale shapes (batch=2, seq=8, in=32, out=32), f32 ----
    batch, seq, in_f, out_f = 2, 8, 32, 32
    x = jax.random.normal(kx, (batch, seq, in_f), dtype=jnp.float32)
    y = jax.random.normal(ky, (batch, seq, out_f), dtype=jnp.float32)
    z = jax.random.normal(kz, (batch, seq, out_f), dtype=jnp.float32)
    weight = jax.random.normal(kw, (out_f, in_f), dtype=jnp.float32) * 0.05
    bias = jax.random.normal(kb, (out_f,), dtype=jnp.float32) * 0.05

    out = jax.block_until_ready(ipex_linear_add_add(x, weight, bias, y, z))
    ref = (jnp.einsum("bsk,nk->bsn", x, weight, precision=lax.Precision.HIGHEST)
           + bias + y + z)
    assert jnp.allclose(out, ref, atol=1e-3, rtol=1e-3), "test1 mismatch"

    # --- Test 2: ragged, multi-tile M/N/K (exercises K reduction + padding) ---
    M2, K2, N2 = 140, 300, 260
    kx2, ky2, kz2, kw2, kb2 = jax.random.split(jax.random.PRNGKey(1), 5)
    x_2 = jax.random.normal(kx2, (M2, K2), dtype=jnp.float32)
    y_2 = jax.random.normal(ky2, (M2, N2), dtype=jnp.float32)
    z_2 = jax.random.normal(kz2, (M2, N2), dtype=jnp.float32)
    w_2 = jax.random.normal(kw2, (N2, K2), dtype=jnp.float32) * 0.05
    b_2 = jax.random.normal(kb2, (N2,), dtype=jnp.float32) * 0.05
    out2 = jax.block_until_ready(
        ipex_linear_add_add(x_2, w_2, b_2, y_2, z_2, tm=64, tn=128, tk=128))
    ref2 = (jnp.einsum("mk,nk->mn", x_2, w_2, precision=lax.Precision.HIGHEST)
            + b_2 + y_2 + z_2)
    assert jnp.allclose(out2, ref2, atol=2e-3, rtol=2e-3), "test2 mismatch"

    # --- Test 3: bf16 MXU compute path (f32 in/out, bf16 matmul operands) -----
    out3 = jax.block_until_ready(
        ipex_linear_add_add(x, weight, bias, y, z, compute_dtype=jnp.bfloat16))
    assert jnp.allclose(out3, ref, atol=5e-2, rtol=5e-2), "test3 mismatch"

    print("KERNEL_OK")
</pallas_src>

<mosaic_0001>
module attributes {stable_mosaic.version = 11 : i64} {
  func.func @_linear_add_add_kernel(%arg0: i32, %arg1: i32, %arg2: i32, %arg3: memref<16x128xf32, #tpu.memory_space<vmem>>, %arg4: memref<128x128xf32, #tpu.memory_space<vmem>>, %arg5: memref<1x128xf32, #tpu.memory_space<vmem>>, %arg6: memref<16x128xf32, #tpu.memory_space<vmem>>, %arg7: memref<16x128xf32, #tpu.memory_space<vmem>>, %arg8: memref<16x128xf32, #tpu.memory_space<vmem>>, %arg9: memref<16x128xf32, #tpu.memory_space<vmem>>) attributes {dimension_semantics = [#tpu.dimension_semantics<parallel>, #tpu.dimension_semantics<parallel>, #tpu.dimension_semantics<arbitrary>], iteration_bounds = array<i64: 1, 1, 1>, scalar_prefetch = 0 : i64, scratch_operands = 1 : i64, tpu.core_type = #tpu.core_type<tc>, window_params = [{transform_indices = @transform_0, window_bounds = array<i64: 16, 128>}, {transform_indices = @transform_1, window_bounds = array<i64: 128, 128>}, {transform_indices = @transform_2, window_bounds = array<i64: 1, 128>}, {transform_indices = @transform_3, window_bounds = array<i64: 16, 128>}, {transform_indices = @transform_4, window_bounds = array<i64: 16, 128>}, {transform_indices = @transform_5, window_bounds = array<i64: 16, 128>}]} {
    %c0_i32 = arith.constant 0 : i32
    %0 = arith.cmpi eq, %arg2, %c0_i32 : i32
    %1 = arith.extui %0 : i1 to i32
    %c0_i32_0 = arith.constant 0 : i32
    %2 = arith.cmpi ne, %1, %c0_i32_0 : i32
    scf.if %2 {
      %cst_10 = arith.constant 0.000000e+00 : f32
      %12 = vector.broadcast %cst_10 : f32 to vector<16x128xf32>
      %c0_11 = arith.constant 0 : index
      %c0_12 = arith.constant 0 : index
      %13 = vector.load %arg9[%c0_11, %c0_12] : memref<16x128xf32, #tpu.memory_space<vmem>>, vector<16x128xf32>
      tpu.vector_store %arg9[%c0_11, %c0_12], %12 {strides = array<i32>} : memref<16x128xf32, #tpu.memory_space<vmem>>, vector<16x128xf32>,
    } else {
    }
    %c0 = arith.constant 0 : index
    %c0_1 = arith.constant 0 : index
    %3 = vector.load %arg9[%c0, %c0_1] : memref<16x128xf32, #tpu.memory_space<vmem>>, vector<16x128xf32>
    %c0_2 = arith.constant 0 : index
    %c0_3 = arith.constant 0 : index
    %4 = vector.load %arg3[%c0_2, %c0_3] : memref<16x128xf32, #tpu.memory_space<vmem>>, vector<16x128xf32>
    %c0_4 = arith.constant 0 : index
    %c0_5 = arith.constant 0 : index
    %5 = vector.load %arg4[%c0_4, %c0_5] : memref<128x128xf32, #tpu.memory_space<vmem>>, vector<128x128xf32>
    %cst = arith.constant dense<0.000000e+00> : vector<16x128xf32>
    %6 = tpu.matmul %4, %5, %cst {dimension_numbers = #tpu.dot_dimension_numbers<[1], [0], [0], [1], [0, 0, 1, 1], [], []>} : vector<16x128xf32>, vector<128x128xf32>, vector<16x128xf32> -> vector<16x128xf32>
    %7 = arith.addf %3, %6 : vector<16x128xf32>
    %c0_6 = arith.constant 0 : index
    %c0_7 = arith.constant 0 : index
    %8 = vector.load %arg9[%c0_6, %c0_7] : memref<16x128xf32, #tpu.memory_space<vmem>>, vector<16x128xf32>
    tpu.vector_store %arg9[%c0_6, %c0_7], %7 {strides = array<i32>} : memref<16x128xf32, #tpu.memory_space<vmem>>, vector<16x128xf32>,
    %c0_i32_8 = arith.constant 0 : i32
    %9 = arith.cmpi eq, %arg2, %c0_i32_8 : i32
    %10 = arith.extui %9 : i1 to i32
    %c0_i32_9 = arith.constant 0 : i32
    %11 = arith.cmpi ne, %10, %c0_i32_9 : i32
    scf.if %11 {
      %c0_10 = arith.constant 0 : index
      %c0_11 = arith.constant 0 : index
      %12 = vector.load %arg9[%c0_10, %c0_11] : memref<16x128xf32, #tpu.memory_space<vmem>>, vector<16x128xf32>
      %c0_12 = arith.constant 0 : index
      %c0_13 = arith.constant 0 : index
      %13 = vector.load %arg5[%c0_12, %c0_13] : memref<1x128xf32, #tpu.memory_space<vmem>>, vector<1x128xf32>
      %14 = vector.broadcast %13 : vector<1x128xf32> to vector<16x128xf32>
      %15 = arith.addf %12, %14 : vector<16x128xf32>
      %c0_14 = arith.constant 0 : index
      %c0_15 = arith.constant 0 : index
      %16 = vector.load %arg6[%c0_14, %c0_15] : memref<16x128xf32, #tpu.memory_space<vmem>>, vector<16x128xf32>
      %17 = arith.addf %15, %16 : vector<16x128xf32>
      %c0_16 = arith.constant 0 : index
      %c0_17 = arith.constant 0 : index
      %18 = vector.load %arg7[%c0_16, %c0_17] : memref<16x128xf32, #tpu.memory_space<vmem>>, vector<16x128xf32>
      %19 = arith.addf %17, %18 : vector<16x128xf32>
      %c0_18 = arith.constant 0 : index
      %c0_19 = arith.constant 0 : index
      %20 = vector.load %arg8[%c0_18, %c0_19] : memref<16x128xf32, #tpu.memory_space<vmem>>, vector<16x128xf32>
      tpu.vector_store %arg8[%c0_18, %c0_19], %19 {strides = array<i32>} : memref<16x128xf32, #tpu.memory_space<vmem>>, vector<16x128xf32>,
    } else {
    }
    return
  }
  func.func @transform_0(%arg0: i32, %arg1: i32, %arg2: i32) -> (i32, i32) {
    %c0_i32 = arith.constant 0 : i32
    return %arg0, %arg2 : i32, i32
  }
  func.func @transform_1(%arg0: i32, %arg1: i32, %arg2: i32) -> (i32, i32) {
    %c0_i32 = arith.constant 0 : i32
    return %arg2, %arg1 : i32, i32
  }
  func.func @transform_2(%arg0: i32, %arg1: i32, %arg2: i32) -> (i32, i32) {
    %c0_i32 = arith.constant 0 : i32
    %c0_i32_0 = arith.constant 0 : i32
    return %c0_i32, %arg1 : i32, i32
  }
  func.func @transform_3(%arg0: i32, %arg1: i32, %arg2: i32) -> (i32, i32) {
    %c0_i32 = arith.constant 0 : i32
    return %arg0, %arg1 : i32, i32
  }
  func.func @transform_4(%arg0: i32, %arg1: i32, %arg2: i32) -> (i32, i32) {
    %c0_i32 = arith.constant 0 : i32
    return %arg0, %arg1 : i32, i32
  }
  func.func @transform_5(%arg0: i32, %arg1: i32, %arg2: i32) -> (i32, i32) {
    %c0_i32 = arith.constant 0 : i32
    return %arg0, %arg1 : i32, i32
  }
}

</mosaic_0001>

<bundles_post_ra>
// kernel: _linear_add_add_impl.1
= control target key start
LH: loop header
LB: loop body
LE: loop exit
PB: predicated region body
PF: predicated region fallthrough
CT: control target
= control target key end

     0   :  { %s220_s1 = inlined_call_operand.vmem [shape: f32[128,128], index: 1, kind: input, shape index: {}]   ;;  %s221_s2 = inlined_call_operand.vmem [shape: f32[1,128], index: 2, kind: input, shape index: {}]   ;;  %s222_s0 = inlined_call_operand.vmem [shape: f32[16,128], index: 0, kind: input, shape index: {}]   ;;  %s223_s3 = inlined_call_operand.vmem [shape: f32[16,128], index: 3, kind: input, shape index: {}]   ;;  %s224_s4 = inlined_call_operand.vmem [shape: f32[16,128], index: 4, kind: input, shape index: {}, may-alias: {4,5}]   ;;  %s225_s5 = inlined_call_operand.vmem [shape: f32[16,128], index: 5, kind: output, shape index: {}, may-alias: {4,5}]  }
   0x1   :  { %v45_v0 = vld [vmem:[%s220_s1 + $0x78] sm:$0xff]  ;;  %v44_v1 = vld [vmem:[%s220_s1 + $0x70] sm:$0xff]  ;;  %v43_v2 = vld [vmem:[%s220_s1 + $0x68] sm:$0xff] }
   0x2   :  { %46 = vmatpush.msra.mxu0 %v45_v0  ;;  %98 = vmatpush.msra.mxu1 %v45_v0  ;;  %v42_v3 = vld [vmem:[%s220_s1 + $0x60] sm:$0xff]  ;;  %v41_v4 = vld [vmem:[%s220_s1 + $0x58] sm:$0xff]  ;;  %v40_v5 = vld [vmem:[%s220_s1 + $0x50] sm:$0xff] }
   0x3   :  { %v39_v6 = vld [vmem:[%s220_s1 + $0x48] sm:$0xff]  ;;  %v38_v7 = vld [vmem:[%s220_s1 + $0x40] sm:$0xff]  ;;  %v37_v8 = vld [vmem:[%s220_s1 + $0x38] sm:$0xff] }
   0x4   :  { %47 = vmatpush.msra.mxu0 %v44_v1  ;;  %99 = vmatpush.msra.mxu1 %v44_v1  ;;  %v36_v9 = vld [vmem:[%s220_s1 + $0x30] sm:$0xff]  ;;  %v35_v10 = vld [vmem:[%s220_s1 + $0x28] sm:$0xff]  ;;  %v34_v11 = vld [vmem:[%s220_s1 + $0x20] sm:$0xff] }
   0x5   :  { %v33_v12 = vld [vmem:[%s220_s1 + $0x18] sm:$0xff]  ;;  %v32_v13 = vld [vmem:[%s220_s1 + $0x10] sm:$0xff]  ;;  %v31_v14 = vld [vmem:[%s220_s1 + $0x8] sm:$0xff] }
   0x6   :  { %48 = vmatpush.msra.mxu0 %v43_v2  ;;  %100 = vmatpush.msra.mxu1 %v43_v2  ;;  %v30_v15 = vld [vmem:[%s220_s1] sm:$0xff]  ;;  %v29_v17 = vld [vmem:[%s222_s0 + $0x8] sm:$0xff] }
   0x7   :  { %v28_v16 = vld [vmem:[%s222_s0] sm:$0xff]  ;;  %v85_v22 = vld [vmem:[%s223_s3 + $0x8] sm:$0xff] }
   0x8   :  { %49 = vmatpush.msra.mxu0 %v42_v3  ;;  %101 = vmatpush.msra.mxu1 %v42_v3  ;;  %v114_v18 = vld [vmem:[%s221_s2] ss:$0 sm:$0xff]  ;;  %v89_v26 = vld [vmem:[%s224_s4 + $0x8] sm:$0xff] }
   0x9   :  { %v84_v20 = vld [vmem:[%s223_s3] sm:$0xff] }
   0xa   :  { %50 = vmatpush.msra.mxu0 %v41_v4  ;;  %102 = vmatpush.msra.mxu1 %v41_v4  ;;  %v88_v25 = vld [vmem:[%s224_s4] sm:$0xff] }
   0xc   :  { %51 = vmatpush.msra.mxu0 %v40_v5  ;;  %103 = vmatpush.msra.mxu1 %v40_v5 }
   0xe   :  { %52 = vmatpush.msra.mxu0 %v39_v6  ;;  %104 = vmatpush.msra.mxu1 %v39_v6 }
  0x10   :  { %53 = vmatpush.msra.mxu0 %v38_v7  ;;  %105 = vmatpush.msra.mxu1 %v38_v7 }
  0x12   :  { %54 = vmatpush.msra.mxu0 %v37_v8  ;;  %106 = vmatpush.msra.mxu1 %v37_v8 }
  0x14   :  { %55 = vmatpush.msra.mxu0 %v36_v9  ;;  %107 = vmatpush.msra.mxu1 %v36_v9 }
  0x16   :  { %56 = vmatpush.msra.mxu0 %v35_v10  ;;  %108 = vmatpush.msra.mxu1 %v35_v10 }
  0x18   :  { %57 = vmatpush.msra.mxu0 %v34_v11  ;;  %109 = vmatpush.msra.mxu1 %v34_v11 }
  0x1a   :  { %58 = vmatpush.msra.mxu0 %v33_v12  ;;  %110 = vmatpush.msra.mxu1 %v33_v12 }
  0x1c   :  { %59 = vmatpush.msra.mxu0 %v32_v13  ;;  %111 = vmatpush.msra.mxu1 %v32_v13 }
  0x1e   :  { %60 = vmatpush.msra.mxu0 %v31_v14  ;;  %112 = vmatpush.msra.mxu1 %v31_v14 }
  0x20   :  { %61 = vmatpush.msra.mxu0 %v30_v15  ;;  %113 = vmatpush.msra.mxu1 %v30_v15 }
  0x21   :  { %62 = vmatmul.f32.vlgmr.msra.gmra.mxu0 %v28_v16  ;;  %65 = vmatmul.f32.vlgmr.msra.gmra.mxu1 %v29_v17 }
  0x9e   :  { %v63_v19 = vpop.f32.mrf.mxu0  ;;  %v66_v21 = vpop.f32.mrf.mxu1 }
  0x9f   :  { %v82_v23 = vadd.f32 %v114_v18, %v63_v19  ;;  %v83_v24 = vadd.f32 %v114_v18, %v66_v21 }
  0xa1   :  { %v86_v27 = vadd.f32 %v84_v20, %v82_v23  ;;  %v87_v28 = vadd.f32 %v85_v22, %v83_v24 }
  0xa3   :  { %v90_v29 = vadd.f32 %v88_v25, %v86_v27  ;;  %v91_v30 = vadd.f32 %v89_v26, %v87_v28 }
  0xa5   :  { %92 = vst [vmem:[%s225_s5] sm:$0xff] %v90_v29 }
  0xa6   :  { %93 = vst [vmem:[%s225_s5 + $0x8] sm:$0xff] %v91_v30 }

</bundles_post_ra>
